<compile_context>
chip_gen: v7x
topology: tpu7x:2x2x1
jax: 0.10.0
libtpu: 0.0.40
codegen_flags: <defaults>
</compile_context>

<pallas_src>
import jax
import jax.numpy as jnp
from jax import lax
from jax.experimental import pallas as pl
from jax.experimental.pallas import tpu as pltpu

B, T, C, H = 2, 8, 4, 32          # batch, time steps, spot features, hidden
TP = 128                          # time axis padded to one full lane width
DT = 1.0 / 250.0                  # self.dt of the concrete hedger
NP = C + 2                        # param groups: W1 row per channel, b1, W2
HB = 8                            # hidden units per sublane block
NB = H // HB                      # hidden blocks per batch row
OUT_ROWS = 8                      # output slab rows (one f32 sublane tile)


# ----------------------------- fused kernel ---------------------------------

def _hedger_kernel(spot_ref, p_ref, out_ref):
    # spot_ref: (C*B, TP) f32 VMEM; row c*B + b = spot[b, :, c], zero-padded
    #           for t >= T.  channels: 0=bid, 1=ask, 2=rate_a, 3=rate_b.
    # p_ref:    (NP*H + 8, TP) f32 VMEM; row k*H + j = param k of hidden unit j
    #           repeated across all 128 lanes (k: 0..3 = W1[c, j], 4 = b1[j],
    #           5 = W2[j]).  Last 8 rows = accumulator init (b2 on sublane 0).
    # out_ref:  (8, TP) f32 VMEM; row b (< B) = padded hedge weights (non-zero
    #           only for t in [1, T-2]) with the PnL in padded column TP-1.
    col = lax.broadcasted_iota(jnp.int32, (1, TP), 1)
    rowi = lax.broadcasted_iota(jnp.int32, (OUT_ROWS, TP), 0)

    slab = jnp.zeros((OUT_ROWS, TP), jnp.float32)
    for b in range(B):                                   # static unroll (B=2)
        bid = spot_ref[pl.ds(0 * B + b, 1), :]           # (1, TP)
        ask = spot_ref[pl.ds(1 * B + b, 1), :]
        ra = spot_ref[pl.ds(2 * B + b, 1), :]
        rb = spot_ref[pl.ds(3 * B + b, 1), :]

        # ---- forward(): per-timestep MLP on full (8, TP) vregs --------------
        bid8 = jnp.broadcast_to(bid, (HB, TP))           # sublane broadcast
        ask8 = jnp.broadcast_to(ask, (HB, TP))
        ra8 = jnp.broadcast_to(ra, (HB, TP))
        rb8 = jnp.broadcast_to(rb, (HB, TP))

        acc8 = p_ref[pl.ds(NP * H, HB), :]               # b2 on sublane 0, rest 0
        for g in range(NB):                              # static unroll (4 blocks)
            r0 = g * HB
            z = (bid8 * p_ref[pl.ds(0 * H + r0, HB), :]
                 + ask8 * p_ref[pl.ds(1 * H + r0, HB), :]
                 + ra8 * p_ref[pl.ds(2 * H + r0, HB), :]
                 + rb8 * p_ref[pl.ds(3 * H + r0, HB), :]
                 + p_ref[pl.ds(4 * H + r0, HB), :])
            acc8 = acc8 + jnp.tanh(z) * p_ref[pl.ds(5 * H + r0, HB), :]
        w_full = jnp.sum(acc8, axis=0, keepdims=True)    # (1, TP) sublane reduce

        # padded weights row: zero outside hedged steps t in [1, T-2]
        wa = jnp.where((col >= 1) & (col <= T - 2), w_full, 0.0)

        # ---- get_pnl(): diff via XLU lane rotation, lane reduction ----------
        # wrap column is benign: wa[:, TP-1] == 0 by the mask above.
        prev = pltpu.roll(wa, 1, axis=1)                 # prev[:, t] = wa[:, t-1]
        wd = jnp.where(col >= 1, wa - prev, 0.0)
        price = jnp.where(wd > 0.0, ask, bid)            # pay ask on buys, bid on sells
        rd = ra - rb                                     # rates_diff
        term = -price * wd - rd * wa * DT
        term = jnp.where(col < T, term, 0.0)             # defensive: pads never leak
        pnl = jnp.sum(term, axis=1, keepdims=True)       # (1, 1) lane reduce

        row = jnp.where(col == TP - 1, pnl, wa)          # PnL in padded column
        slab = jnp.where(rowi == b, jnp.broadcast_to(row, (OUT_ROWS, TP)), slab)

    out_ref[...] = slab                                  # single unmasked (8,128) store


# ------------------------------ wrappers --------------------------------------

def pack_params(params):
    """Hoistable glue: pack (w1, b1, w2, b2) into the (NP*H + 8, TP) VMEM slab.
    Do this ONCE when parameters are static; reuse the packed array per call."""
    w1, b1, w2, b2 = params
    cols = jnp.concatenate([w1, b1, w2], axis=0).astype(jnp.float32)      # (6, H)
    pb = jnp.broadcast_to(cols[:, :, None], (NP, H, TP)).reshape(NP * H, TP)
    b2row = jnp.broadcast_to(jnp.asarray(b2, jnp.float32).reshape(1, 1), (1, TP))
    acc_init = jnp.pad(b2row, ((0, HB - 1), (0, 0)))                      # (8, TP)
    return jnp.concatenate([pb, acc_init], axis=0)                        # (200, TP)


@jax.jit
def hedger_get_pnl(spot, packed_params):
    """AbstractHedger.get_pnl: returns (hedging_weights (B, T-2), pnl (B, 1))."""
    # spot glue (transpose + zero-pad of the time axis) fused into the same
    # jit region as the kernel call.
    slab = jnp.transpose(spot, (2, 0, 1)).reshape(C * B, T).astype(jnp.float32)
    slab = jnp.pad(slab, ((0, 0), (0, TP - T)))                           # (8, TP)

    out = pl.pallas_call(
        _hedger_kernel,
        out_shape=jax.ShapeDtypeStruct((OUT_ROWS, TP), jnp.float32),
        in_specs=[pl.BlockSpec(memory_space=pltpu.MemorySpace.VMEM),
                  pl.BlockSpec(memory_space=pltpu.MemorySpace.VMEM)],
        out_specs=pl.BlockSpec(memory_space=pltpu.MemorySpace.VMEM),
    )(slab, packed_params)

    weights = out[:B, 1:T - 1]            # (B, T-2)
    pnl = out[:B, TP - 1:TP]              # (B, 1), from the padded column
    return weights, pnl


# ------------------------------ main ------------------------------------------

if __name__ == "__main__":
    key = jax.random.PRNGKey(0)
    k_spot, k_w1, k_w2 = jax.random.split(key, 3)

    # deterministic inputs / parameters
    spot = jax.random.uniform(k_spot, (B, T, C), jnp.float32, 0.9, 1.1)
    w1 = jax.random.normal(k_w1, (C, H), jnp.float32) * 0.1
    b1 = jnp.zeros((1, H), jnp.float32)
    w2 = jax.random.normal(k_w2, (1, H), jnp.float32) * 0.1
    b2 = jnp.zeros((1, 1), jnp.float32)
    params = (w1, b1, w2, b2)

    packed = pack_params(params)          # hoisted: packed once, reused per call
    weights, pnl = hedger_get_pnl(spot, packed)
    jax.block_until_ready((weights, pnl))

    # plain-JAX reference for forward() (same per-timestep MLP)
    x_flat = spot[:, 1:-1, :].reshape(-1, C)
    ref_w = (jnp.tanh(x_flat @ w1 + b1) @ w2.T + b2).reshape(B, T - 2)

    # plain-JAX reference for get_pnl (mirrors the PyTorch code exactly),
    # evaluated on the kernel's weights so the PnL math is checked in isolation
    wa_ref = jnp.concatenate(
        [jnp.zeros((B, 1), jnp.float32), weights, jnp.zeros((B, 1), jnp.float32)],
        axis=1)
    wd_ref = jnp.diff(wa_ref, axis=1)
    rd_ref = spot[:, :, 2] - spot[:, :, 3]
    bought_r = jnp.where(wd_ref > 0, wd_ref, 0.0)
    sold_r = jnp.where(wd_ref < 0, wd_ref, 0.0)
    ref_pnl = ((-spot[:, 1:, 1] * bought_r).sum(axis=1)
               + (-spot[:, 1:, 0] * sold_r).sum(axis=1)
               + (rd_ref * -wa_ref).sum(axis=1) * DT)[:, None]

    assert weights.shape == (B, T - 2)
    assert pnl.shape == (B, 1)
    assert jnp.allclose(weights, ref_w, atol=1e-4, rtol=1e-4), (weights, ref_w)
    assert jnp.allclose(pnl, ref_pnl, atol=1e-5), (pnl, ref_pnl)
    print("KERNEL_OK")
</pallas_src>

<mosaic_0001>
module attributes {stable_mosaic.version = 11 : i64} {
  func.func @_hedger_kernel(%arg0: memref<8x128xf32, #tpu.memory_space<vmem>>, %arg1: memref<200x128xf32, #tpu.memory_space<vmem>>, %arg2: memref<8x128xf32, #tpu.memory_space<vmem>>) attributes {dimension_semantics = [], scalar_prefetch = 0 : i64, scratch_operands = 0 : i64, tpu.core_type = #tpu.core_type<tc>} {
    %0 = tpu.iota {dimensions = array<i32: 1>} : vector<1x128xi32>
    %1 = tpu.iota {dimensions = array<i32: 0>} : vector<8x128xi32>
    %cst = arith.constant 0.000000e+00 : f32
    %2 = vector.broadcast %cst : f32 to vector<8x128xf32>
    %c0 = arith.constant 0 : index
    %c0_0 = arith.constant 0 : index
    %3 = vector.load %arg0[%c0, %c0_0] : memref<8x128xf32, #tpu.memory_space<vmem>>, vector<1x128xf32>
    %c2 = arith.constant 2 : index
    %c0_1 = arith.constant 0 : index
    %4 = vector.load %arg0[%c2, %c0_1] : memref<8x128xf32, #tpu.memory_space<vmem>>, vector<1x128xf32>
    %c4 = arith.constant 4 : index
    %c0_2 = arith.constant 0 : index
    %5 = vector.load %arg0[%c4, %c0_2] : memref<8x128xf32, #tpu.memory_space<vmem>>, vector<1x128xf32>
    %c6 = arith.constant 6 : index
    %c0_3 = arith.constant 0 : index
    %6 = vector.load %arg0[%c6, %c0_3] : memref<8x128xf32, #tpu.memory_space<vmem>>, vector<1x128xf32>
    %7 = vector.shape_cast %3 : vector<1x128xf32> to vector<1x128xf32>
    %8 = vector.broadcast %7 : vector<1x128xf32> to vector<8x128xf32>
    %9 = vector.shape_cast %4 : vector<1x128xf32> to vector<1x128xf32>
    %10 = vector.broadcast %9 : vector<1x128xf32> to vector<8x128xf32>
    %11 = vector.shape_cast %5 : vector<1x128xf32> to vector<1x128xf32>
    %12 = vector.broadcast %11 : vector<1x128xf32> to vector<8x128xf32>
    %13 = vector.shape_cast %6 : vector<1x128xf32> to vector<1x128xf32>
    %14 = vector.broadcast %13 : vector<1x128xf32> to vector<8x128xf32>
    %c192 = arith.constant 192 : index
    %c0_4 = arith.constant 0 : index
    %15 = vector.load %arg1[%c192, %c0_4] : memref<200x128xf32, #tpu.memory_space<vmem>>, vector<8x128xf32>
    %c0_5 = arith.constant 0 : index
    %c0_6 = arith.constant 0 : index
    %16 = vector.load %arg1[%c0_5, %c0_6] : memref<200x128xf32, #tpu.memory_space<vmem>>, vector<8x128xf32>
    %17 = arith.mulf %8, %16 : vector<8x128xf32>
    %c32 = arith.constant 32 : index
    %c0_7 = arith.constant 0 : index
    %18 = vector.load %arg1[%c32, %c0_7] : memref<200x128xf32, #tpu.memory_space<vmem>>, vector<8x128xf32>
    %19 = arith.mulf %10, %18 : vector<8x128xf32>
    %20 = arith.addf %17, %19 : vector<8x128xf32>
    %c64 = arith.constant 64 : index
    %c0_8 = arith.constant 0 : index
    %21 = vector.load %arg1[%c64, %c0_8] : memref<200x128xf32, #tpu.memory_space<vmem>>, vector<8x128xf32>
    %22 = arith.mulf %12, %21 : vector<8x128xf32>
    %23 = arith.addf %20, %22 : vector<8x128xf32>
    %c96 = arith.constant 96 : index
    %c0_9 = arith.constant 0 : index
    %24 = vector.load %arg1[%c96, %c0_9] : memref<200x128xf32, #tpu.memory_space<vmem>>, vector<8x128xf32>
    %25 = arith.mulf %14, %24 : vector<8x128xf32>
    %26 = arith.addf %23, %25 : vector<8x128xf32>
    %c128 = arith.constant 128 : index
    %c0_10 = arith.constant 0 : index
    %27 = vector.load %arg1[%c128, %c0_10] : memref<200x128xf32, #tpu.memory_space<vmem>>, vector<8x128xf32>
    %28 = arith.addf %26, %27 : vector<8x128xf32>
    %29 = math.tanh %28 : vector<8x128xf32>
    %c160 = arith.constant 160 : index
    %c0_11 = arith.constant 0 : index
    %30 = vector.load %arg1[%c160, %c0_11] : memref<200x128xf32, #tpu.memory_space<vmem>>, vector<8x128xf32>
    %31 = arith.mulf %29, %30 : vector<8x128xf32>
    %32 = arith.addf %15, %31 : vector<8x128xf32>
    %c8 = arith.constant 8 : index
    %c0_12 = arith.constant 0 : index
    %33 = vector.load %arg1[%c8, %c0_12] : memref<200x128xf32, #tpu.memory_space<vmem>>, vector<8x128xf32>
    %34 = arith.mulf %8, %33 : vector<8x128xf32>
    %c40 = arith.constant 40 : index
    %c0_13 = arith.constant 0 : index
    %35 = vector.load %arg1[%c40, %c0_13] : memref<200x128xf32, #tpu.memory_space<vmem>>, vector<8x128xf32>
    %36 = arith.mulf %10, %35 : vector<8x128xf32>
    %37 = arith.addf %34, %36 : vector<8x128xf32>
    %c72 = arith.constant 72 : index
    %c0_14 = arith.constant 0 : index
    %38 = vector.load %arg1[%c72, %c0_14] : memref<200x128xf32, #tpu.memory_space<vmem>>, vector<8x128xf32>
    %39 = arith.mulf %12, %38 : vector<8x128xf32>
    %40 = arith.addf %37, %39 : vector<8x128xf32>
    %c104 = arith.constant 104 : index
    %c0_15 = arith.constant 0 : index
    %41 = vector.load %arg1[%c104, %c0_15] : memref<200x128xf32, #tpu.memory_space<vmem>>, vector<8x128xf32>
    %42 = arith.mulf %14, %41 : vector<8x128xf32>
    %43 = arith.addf %40, %42 : vector<8x128xf32>
    %c136 = arith.constant 136 : index
    %c0_16 = arith.constant 0 : index
    %44 = vector.load %arg1[%c136, %c0_16] : memref<200x128xf32, #tpu.memory_space<vmem>>, vector<8x128xf32>
    %45 = arith.addf %43, %44 : vector<8x128xf32>
    %46 = math.tanh %45 : vector<8x128xf32>
    %c168 = arith.constant 168 : index
    %c0_17 = arith.constant 0 : index
    %47 = vector.load %arg1[%c168, %c0_17] : memref<200x128xf32, #tpu.memory_space<vmem>>, vector<8x128xf32>
    %48 = arith.mulf %46, %47 : vector<8x128xf32>
    %49 = arith.addf %32, %48 : vector<8x128xf32>
    %c16 = arith.constant 16 : index
    %c0_18 = arith.constant 0 : index
    %50 = vector.load %arg1[%c16, %c0_18] : memref<200x128xf32, #tpu.memory_space<vmem>>, vector<8x128xf32>
    %51 = arith.mulf %8, %50 : vector<8x128xf32>
    %c48 = arith.constant 48 : index
    %c0_19 = arith.constant 0 : index
    %52 = vector.load %arg1[%c48, %c0_19] : memref<200x128xf32, #tpu.memory_space<vmem>>, vector<8x128xf32>
    %53 = arith.mulf %10, %52 : vector<8x128xf32>
    %54 = arith.addf %51, %53 : vector<8x128xf32>
    %c80 = arith.constant 80 : index
    %c0_20 = arith.constant 0 : index
    %55 = vector.load %arg1[%c80, %c0_20] : memref<200x128xf32, #tpu.memory_space<vmem>>, vector<8x128xf32>
    %56 = arith.mulf %12, %55 : vector<8x128xf32>
    %57 = arith.addf %54, %56 : vector<8x128xf32>
    %c112 = arith.constant 112 : index
    %c0_21 = arith.constant 0 : index
    %58 = vector.load %arg1[%c112, %c0_21] : memref<200x128xf32, #tpu.memory_space<vmem>>, vector<8x128xf32>
    %59 = arith.mulf %14, %58 : vector<8x128xf32>
    %60 = arith.addf %57, %59 : vector<8x128xf32>
    %c144 = arith.constant 144 : index
    %c0_22 = arith.constant 0 : index
    %61 = vector.load %arg1[%c144, %c0_22] : memref<200x128xf32, #tpu.memory_space<vmem>>, vector<8x128xf32>
    %62 = arith.addf %60, %61 : vector<8x128xf32>
    %63 = math.tanh %62 : vector<8x128xf32>
    %c176 = arith.constant 176 : index
    %c0_23 = arith.constant 0 : index
    %64 = vector.load %arg1[%c176, %c0_23] : memref<200x128xf32, #tpu.memory_space<vmem>>, vector<8x128xf32>
    %65 = arith.mulf %63, %64 : vector<8x128xf32>
    %66 = arith.addf %49, %65 : vector<8x128xf32>
    %c24 = arith.constant 24 : index
    %c0_24 = arith.constant 0 : index
    %67 = vector.load %arg1[%c24, %c0_24] : memref<200x128xf32, #tpu.memory_space<vmem>>, vector<8x128xf32>
    %68 = arith.mulf %8, %67 : vector<8x128xf32>
    %c56 = arith.constant 56 : index
    %c0_25 = arith.constant 0 : index
    %69 = vector.load %arg1[%c56, %c0_25] : memref<200x128xf32, #tpu.memory_space<vmem>>, vector<8x128xf32>
    %70 = arith.mulf %10, %69 : vector<8x128xf32>
    %71 = arith.addf %68, %70 : vector<8x128xf32>
    %c88 = arith.constant 88 : index
    %c0_26 = arith.constant 0 : index
    %72 = vector.load %arg1[%c88, %c0_26] : memref<200x128xf32, #tpu.memory_space<vmem>>, vector<8x128xf32>
    %73 = arith.mulf %12, %72 : vector<8x128xf32>
    %74 = arith.addf %71, %73 : vector<8x128xf32>
    %c120 = arith.constant 120 : index
    %c0_27 = arith.constant 0 : index
    %75 = vector.load %arg1[%c120, %c0_27] : memref<200x128xf32, #tpu.memory_space<vmem>>, vector<8x128xf32>
    %76 = arith.mulf %14, %75 : vector<8x128xf32>
    %77 = arith.addf %74, %76 : vector<8x128xf32>
    %c152 = arith.constant 152 : index
    %c0_28 = arith.constant 0 : index
    %78 = vector.load %arg1[%c152, %c0_28] : memref<200x128xf32, #tpu.memory_space<vmem>>, vector<8x128xf32>
    %79 = arith.addf %77, %78 : vector<8x128xf32>
    %80 = math.tanh %79 : vector<8x128xf32>
    %c184 = arith.constant 184 : index
    %c0_29 = arith.constant 0 : index
    %81 = vector.load %arg1[%c184, %c0_29] : memref<200x128xf32, #tpu.memory_space<vmem>>, vector<8x128xf32>
    %82 = arith.mulf %80, %81 : vector<8x128xf32>
    %83 = arith.addf %66, %82 : vector<8x128xf32>
    %cst_30 = arith.constant dense<0.000000e+00> : vector<128xf32>
    %84 = vector.multi_reduction <add>, %83, %cst_30 [0] : vector<8x128xf32> to vector<128xf32>
    %85 = vector.shape_cast %84 : vector<128xf32> to vector<1x128xf32>
    %c1_i32 = arith.constant 1 : i32
    %86 = vector.broadcast %c1_i32 : i32 to vector<1x128xi32>
    %87 = arith.cmpi sge, %0, %86 : vector<1x128xi32>
    %c6_i32 = arith.constant 6 : i32
    %88 = vector.broadcast %c6_i32 : i32 to vector<1x128xi32>
    %89 = arith.cmpi sle, %0, %88 : vector<1x128xi32>
    %90 = arith.andi %87, %89 : vector<1x128xi1>
    %cst_31 = arith.constant 0.000000e+00 : f32
    %91 = vector.broadcast %cst_31 : f32 to vector<1x128xf32>
    %92 = arith.select %90, %85, %91 : vector<1x128xi1>, vector<1x128xf32>
    %c1_i32_32 = arith.constant 1 : i32
    %93 = tpu.dynamic_rotate %92 by %c1_i32_32 dim 1 : vector<1x128xf32>, i32 -> vector<1x128xf32>
    %c1_i32_33 = arith.constant 1 : i32
    %94 = vector.broadcast %c1_i32_33 : i32 to vector<1x128xi32>
    %95 = arith.cmpi sge, %0, %94 : vector<1x128xi32>
    %96 = arith.subf %92, %93 : vector<1x128xf32>
    %cst_34 = arith.constant 0.000000e+00 : f32
    %97 = vector.broadcast %cst_34 : f32 to vector<1x128xf32>
    %98 = arith.select %95, %96, %97 : vector<1x128xi1>, vector<1x128xf32>
    %cst_35 = arith.constant 0.000000e+00 : f32
    %99 = vector.broadcast %cst_35 : f32 to vector<1x128xf32>
    %100 = arith.cmpf ogt, %98, %99 : vector<1x128xf32>
    %101 = arith.select %100, %4, %3 : vector<1x128xi1>, vector<1x128xf32>
    %102 = arith.subf %5, %6 : vector<1x128xf32>
    %cst_36 = arith.constant 0.000000e+00 : f32
    %103 = vector.broadcast %cst_36 : f32 to vector<1x128xf32>
    %104 = arith.subf %103, %101 : vector<1x128xf32>
    %105 = arith.mulf %104, %98 : vector<1x128xf32>
    %106 = arith.mulf %102, %92 : vector<1x128xf32>
    %cst_37 = arith.constant 4.000000e-03 : f32
    %107 = vector.broadcast %cst_37 : f32 to vector<1x128xf32>
    %108 = arith.mulf %106, %107 : vector<1x128xf32>
    %109 = arith.subf %105, %108 : vector<1x128xf32>
    %c8_i32 = arith.constant 8 : i32
    %110 = vector.broadcast %c8_i32 : i32 to vector<1x128xi32>
    %111 = arith.cmpi slt, %0, %110 : vector<1x128xi32>
    %cst_38 = arith.constant 0.000000e+00 : f32
    %112 = vector.broadcast %cst_38 : f32 to vector<1x128xf32>
    %113 = arith.select %111, %109, %112 : vector<1x128xi1>, vector<1x128xf32>
    %cst_39 = arith.constant dense<0.000000e+00> : vector<1xf32>
    %114 = vector.multi_reduction <add>, %113, %cst_39 [1] : vector<1x128xf32> to vector<1xf32>
    %115 = vector.shape_cast %114 : vector<1xf32> to vector<1x1xf32>
    %c127_i32 = arith.constant 127 : i32
    %116 = vector.broadcast %c127_i32 : i32 to vector<1x128xi32>
    %117 = arith.cmpi eq, %0, %116 : vector<1x128xi32>
    %118 = vector.shape_cast %115 : vector<1x1xf32> to vector<1x1xf32>
    %119 = vector.broadcast %118 : vector<1x1xf32> to vector<1x128xf32>
    %120 = arith.select %117, %119, %92 : vector<1x128xi1>, vector<1x128xf32>
    %c0_i32 = arith.constant 0 : i32
    %121 = vector.broadcast %c0_i32 : i32 to vector<8x128xi32>
    %122 = arith.cmpi eq, %1, %121 : vector<8x128xi32>
    %123 = vector.shape_cast %120 : vector<1x128xf32> to vector<1x128xf32>
    %124 = vector.broadcast %123 : vector<1x128xf32> to vector<8x128xf32>
    %125 = arith.select %122, %124, %2 : vector<8x128xi1>, vector<8x128xf32>
    %c1 = arith.constant 1 : index
    %c0_40 = arith.constant 0 : index
    %126 = vector.load %arg0[%c1, %c0_40] : memref<8x128xf32, #tpu.memory_space<vmem>>, vector<1x128xf32>
    %c3 = arith.constant 3 : index
    %c0_41 = arith.constant 0 : index
    %127 = vector.load %arg0[%c3, %c0_41] : memref<8x128xf32, #tpu.memory_space<vmem>>, vector<1x128xf32>
    %c5 = arith.constant 5 : index
    %c0_42 = arith.constant 0 : index
    %128 = vector.load %arg0[%c5, %c0_42] : memref<8x128xf32, #tpu.memory_space<vmem>>, vector<1x128xf32>
    %c7 = arith.constant 7 : index
    %c0_43 = arith.constant 0 : index
    %129 = vector.load %arg0[%c7, %c0_43] : memref<8x128xf32, #tpu.memory_space<vmem>>, vector<1x128xf32>
    %130 = vector.shape_cast %126 : vector<1x128xf32> to vector<1x128xf32>
    %131 = vector.broadcast %130 : vector<1x128xf32> to vector<8x128xf32>
    %132 = vector.shape_cast %127 : vector<1x128xf32> to vector<1x128xf32>
    %133 = vector.broadcast %132 : vector<1x128xf32> to vector<8x128xf32>
    %134 = vector.shape_cast %128 : vector<1x128xf32> to vector<1x128xf32>
    %135 = vector.broadcast %134 : vector<1x128xf32> to vector<8x128xf32>
    %136 = vector.shape_cast %129 : vector<1x128xf32> to vector<1x128xf32>
    %137 = vector.broadcast %136 : vector<1x128xf32> to vector<8x128xf32>
    %c192_44 = arith.constant 192 : index
    %c0_45 = arith.constant 0 : index
    %138 = vector.load %arg1[%c192_44, %c0_45] : memref<200x128xf32, #tpu.memory_space<vmem>>, vector<8x128xf32>
    %c0_46 = arith.constant 0 : index
    %c0_47 = arith.constant 0 : index
    %139 = vector.load %arg1[%c0_46, %c0_47] : memref<200x128xf32, #tpu.memory_space<vmem>>, vector<8x128xf32>
    %140 = arith.mulf %131, %139 : vector<8x128xf32>
    %c32_48 = arith.constant 32 : index
    %c0_49 = arith.constant 0 : index
    %141 = vector.load %arg1[%c32_48, %c0_49] : memref<200x128xf32, #tpu.memory_space<vmem>>, vector<8x128xf32>
    %142 = arith.mulf %133, %141 : vector<8x128xf32>
    %143 = arith.addf %140, %142 : vector<8x128xf32>
    %c64_50 = arith.constant 64 : index
    %c0_51 = arith.constant 0 : index
    %144 = vector.load %arg1[%c64_50, %c0_51] : memref<200x128xf32, #tpu.memory_space<vmem>>, vector<8x128xf32>
    %145 = arith.mulf %135, %144 : vector<8x128xf32>
    %146 = arith.addf %143, %145 : vector<8x128xf32>
    %c96_52 = arith.constant 96 : index
    %c0_53 = arith.constant 0 : index
    %147 = vector.load %arg1[%c96_52, %c0_53] : memref<200x128xf32, #tpu.memory_space<vmem>>, vector<8x128xf32>
    %148 = arith.mulf %137, %147 : vector<8x128xf32>
    %149 = arith.addf %146, %148 : vector<8x128xf32>
    %c128_54 = arith.constant 128 : index
    %c0_55 = arith.constant 0 : index
    %150 = vector.load %arg1[%c128_54, %c0_55] : memref<200x128xf32, #tpu.memory_space<vmem>>, vector<8x128xf32>
    %151 = arith.addf %149, %150 : vector<8x128xf32>
    %152 = math.tanh %151 : vector<8x128xf32>
    %c160_56 = arith.constant 160 : index
    %c0_57 = arith.constant 0 : index
    %153 = vector.load %arg1[%c160_56, %c0_57] : memref<200x128xf32, #tpu.memory_space<vmem>>, vector<8x128xf32>
    %154 = arith.mulf %152, %153 : vector<8x128xf32>
    %155 = arith.addf %138, %154 : vector<8x128xf32>
    %c8_58 = arith.constant 8 : index
    %c0_59 = arith.constant 0 : index
    %156 = vector.load %arg1[%c8_58, %c0_59] : memref<200x128xf32, #tpu.memory_space<vmem>>, vector<8x128xf32>
    %157 = arith.mulf %131, %156 : vector<8x128xf32>
    %c40_60 = arith.constant 40 : index
    %c0_61 = arith.constant 0 : index
    %158 = vector.load %arg1[%c40_60, %c0_61] : memref<200x128xf32, #tpu.memory_space<vmem>>, vector<8x128xf32>
    %159 = arith.mulf %133, %158 : vector<8x128xf32>
    %160 = arith.addf %157, %159 : vector<8x128xf32>
    %c72_62 = arith.constant 72 : index
    %c0_63 = arith.constant 0 : index
    %161 = vector.load %arg1[%c72_62, %c0_63] : memref<200x128xf32, #tpu.memory_space<vmem>>, vector<8x128xf32>
    %162 = arith.mulf %135, %161 : vector<8x128xf32>
    %163 = arith.addf %160, %162 : vector<8x128xf32>
    %c104_64 = arith.constant 104 : index
    %c0_65 = arith.constant 0 : index
    %164 = vector.load %arg1[%c104_64, %c0_65] : memref<200x128xf32, #tpu.memory_space<vmem>>, vector<8x128xf32>
    %165 = arith.mulf %137, %164 : vector<8x128xf32>
    %166 = arith.addf %163, %165 : vector<8x128xf32>
    %c136_66 = arith.constant 136 : index
    %c0_67 = arith.constant 0 : index
    %167 = vector.load %arg1[%c136_66, %c0_67] : memref<200x128xf32, #tpu.memory_space<vmem>>, vector<8x128xf32>
    %168 = arith.addf %166, %167 : vector<8x128xf32>
    %169 = math.tanh %168 : vector<8x128xf32>
    %c168_68 = arith.constant 168 : index
    %c0_69 = arith.constant 0 : index
    %170 = vector.load %arg1[%c168_68, %c0_69] : memref<200x128xf32, #tpu.memory_space<vmem>>, vector<8x128xf32>
    %171 = arith.mulf %169, %170 : vector<8x128xf32>
    %172 = arith.addf %155, %171 : vector<8x128xf32>
    %c16_70 = arith.constant 16 : index
    %c0_71 = arith.constant 0 : index
    %173 = vector.load %arg1[%c16_70, %c0_71] : memref<200x128xf32, #tpu.memory_space<vmem>>, vector<8x128xf32>
    %174 = arith.mulf %131, %173 : vector<8x128xf32>
    %c48_72 = arith.constant 48 : index
    %c0_73 = arith.constant 0 : index
    %175 = vector.load %arg1[%c48_72, %c0_73] : memref<200x128xf32, #tpu.memory_space<vmem>>, vector<8x128xf32>
    %176 = arith.mulf %133, %175 : vector<8x128xf32>
    %177 = arith.addf %174, %176 : vector<8x128xf32>
    %c80_74 = arith.constant 80 : index
    %c0_75 = arith.constant 0 : index
    %178 = vector.load %arg1[%c80_74, %c0_75] : memref<200x128xf32, #tpu.memory_space<vmem>>, vector<8x128xf32>
    %179 = arith.mulf %135, %178 : vector<8x128xf32>
    %180 = arith.addf %177, %179 : vector<8x128xf32>
    %c112_76 = arith.constant 112 : index
    %c0_77 = arith.constant 0 : index
    %181 = vector.load %arg1[%c112_76, %c0_77] : memref<200x128xf32, #tpu.memory_space<vmem>>, vector<8x128xf32>
    %182 = arith.mulf %137, %181 : vector<8x128xf32>
    %183 = arith.addf %180, %182 : vector<8x128xf32>
    %c144_78 = arith.constant 144 : index
    %c0_79 = arith.constant 0 : index
    %184 = vector.load %arg1[%c144_78, %c0_79] : memref<200x128xf32, #tpu.memory_space<vmem>>, vector<8x128xf32>
    %185 = arith.addf %183, %184 : vector<8x128xf32>
    %186 = math.tanh %185 : vector<8x128xf32>
    %c176_80 = arith.constant 176 : index
    %c0_81 = arith.constant 0 : index
    %187 = vector.load %arg1[%c176_80, %c0_81] : memref<200x128xf32, #tpu.memory_space<vmem>>, vector<8x128xf32>
    %188 = arith.mulf %186, %187 : vector<8x128xf32>
    %189 = arith.addf %172, %188 : vector<8x128xf32>
    %c24_82 = arith.constant 24 : index
    %c0_83 = arith.constant 0 : index
    %190 = vector.load %arg1[%c24_82, %c0_83] : memref<200x128xf32, #tpu.memory_space<vmem>>, vector<8x128xf32>
    %191 = arith.mulf %131, %190 : vector<8x128xf32>
    %c56_84 = arith.constant 56 : index
    %c0_85 = arith.constant 0 : index
    %192 = vector.load %arg1[%c56_84, %c0_85] : memref<200x128xf32, #tpu.memory_space<vmem>>, vector<8x128xf32>
    %193 = arith.mulf %133, %192 : vector<8x128xf32>
    %194 = arith.addf %191, %193 : vector<8x128xf32>
    %c88_86 = arith.constant 88 : index
    %c0_87 = arith.constant 0 : index
    %195 = vector.load %arg1[%c88_86, %c0_87] : memref<200x128xf32, #tpu.memory_space<vmem>>, vector<8x128xf32>
    %196 = arith.mulf %135, %195 : vector<8x128xf32>
    %197 = arith.addf %194, %196 : vector<8x128xf32>
    %c120_88 = arith.constant 120 : index
    %c0_89 = arith.constant 0 : index
    %198 = vector.load %arg1[%c120_88, %c0_89] : memref<200x128xf32, #tpu.memory_space<vmem>>, vector<8x128xf32>
    %199 = arith.mulf %137, %198 : vector<8x128xf32>
    %200 = arith.addf %197, %199 : vector<8x128xf32>
    %c152_90 = arith.constant 152 : index
    %c0_91 = arith.constant 0 : index
    %201 = vector.load %arg1[%c152_90, %c0_91] : memref<200x128xf32, #tpu.memory_space<vmem>>, vector<8x128xf32>
    %202 = arith.addf %200, %201 : vector<8x128xf32>
    %203 = math.tanh %202 : vector<8x128xf32>
    %c184_92 = arith.constant 184 : index
    %c0_93 = arith.constant 0 : index
    %204 = vector.load %arg1[%c184_92, %c0_93] : memref<200x128xf32, #tpu.memory_space<vmem>>, vector<8x128xf32>
    %205 = arith.mulf %203, %204 : vector<8x128xf32>
    %206 = arith.addf %189, %205 : vector<8x128xf32>
    %cst_94 = arith.constant dense<0.000000e+00> : vector<128xf32>
    %207 = vector.multi_reduction <add>, %206, %cst_94 [0] : vector<8x128xf32> to vector<128xf32>
    %208 = vector.shape_cast %207 : vector<128xf32> to vector<1x128xf32>
    %c1_i32_95 = arith.constant 1 : i32
    %209 = vector.broadcast %c1_i32_95 : i32 to vector<1x128xi32>
    %210 = arith.cmpi sge, %0, %209 : vector<1x128xi32>
    %c6_i32_96 = arith.constant 6 : i32
    %211 = vector.broadcast %c6_i32_96 : i32 to vector<1x128xi32>
    %212 = arith.cmpi sle, %0, %211 : vector<1x128xi32>
    %213 = arith.andi %210, %212 : vector<1x128xi1>
    %cst_97 = arith.constant 0.000000e+00 : f32
    %214 = vector.broadcast %cst_97 : f32 to vector<1x128xf32>
    %215 = arith.select %213, %208, %214 : vector<1x128xi1>, vector<1x128xf32>
    %c1_i32_98 = arith.constant 1 : i32
    %216 = tpu.dynamic_rotate %215 by %c1_i32_98 dim 1 : vector<1x128xf32>, i32 -> vector<1x128xf32>
    %c1_i32_99 = arith.constant 1 : i32
    %217 = vector.broadcast %c1_i32_99 : i32 to vector<1x128xi32>
    %218 = arith.cmpi sge, %0, %217 : vector<1x128xi32>
    %219 = arith.subf %215, %216 : vector<1x128xf32>
    %cst_100 = arith.constant 0.000000e+00 : f32
    %220 = vector.broadcast %cst_100 : f32 to vector<1x128xf32>
    %221 = arith.select %218, %219, %220 : vector<1x128xi1>, vector<1x128xf32>
    %cst_101 = arith.constant 0.000000e+00 : f32
    %222 = vector.broadcast %cst_101 : f32 to vector<1x128xf32>
    %223 = arith.cmpf ogt, %221, %222 : vector<1x128xf32>
    %224 = arith.select %223, %127, %126 : vector<1x128xi1>, vector<1x128xf32>
    %225 = arith.subf %128, %129 : vector<1x128xf32>
    %cst_102 = arith.constant 0.000000e+00 : f32
    %226 = vector.broadcast %cst_102 : f32 to vector<1x128xf32>
    %227 = arith.subf %226, %224 : vector<1x128xf32>
    %228 = arith.mulf %227, %221 : vector<1x128xf32>
    %229 = arith.mulf %225, %215 : vector<1x128xf32>
    %cst_103 = arith.constant 4.000000e-03 : f32
    %230 = vector.broadcast %cst_103 : f32 to vector<1x128xf32>
    %231 = arith.mulf %229, %230 : vector<1x128xf32>
    %232 = arith.subf %228, %231 : vector<1x128xf32>
    %c8_i32_104 = arith.constant 8 : i32
    %233 = vector.broadcast %c8_i32_104 : i32 to vector<1x128xi32>
    %234 = arith.cmpi slt, %0, %233 : vector<1x128xi32>
    %cst_105 = arith.constant 0.000000e+00 : f32
    %235 = vector.broadcast %cst_105 : f32 to vector<1x128xf32>
    %236 = arith.select %234, %232, %235 : vector<1x128xi1>, vector<1x128xf32>
    %cst_106 = arith.constant dense<0.000000e+00> : vector<1xf32>
    %237 = vector.multi_reduction <add>, %236, %cst_106 [1] : vector<1x128xf32> to vector<1xf32>
    %238 = vector.shape_cast %237 : vector<1xf32> to vector<1x1xf32>
    %c127_i32_107 = arith.constant 127 : i32
    %239 = vector.broadcast %c127_i32_107 : i32 to vector<1x128xi32>
    %240 = arith.cmpi eq, %0, %239 : vector<1x128xi32>
    %241 = vector.shape_cast %238 : vector<1x1xf32> to vector<1x1xf32>
    %242 = vector.broadcast %241 : vector<1x1xf32> to vector<1x128xf32>
    %243 = arith.select %240, %242, %215 : vector<1x128xi1>, vector<1x128xf32>
    %c1_i32_108 = arith.constant 1 : i32
    %244 = vector.broadcast %c1_i32_108 : i32 to vector<8x128xi32>
    %245 = arith.cmpi eq, %1, %244 : vector<8x128xi32>
    %246 = vector.shape_cast %243 : vector<1x128xf32> to vector<1x128xf32>
    %247 = vector.broadcast %246 : vector<1x128xf32> to vector<8x128xf32>
    %248 = arith.select %245, %247, %125 : vector<8x128xi1>, vector<8x128xf32>
    %c0_109 = arith.constant 0 : index
    %c0_110 = arith.constant 0 : index
    %249 = vector.load %arg2[%c0_109, %c0_110] : memref<8x128xf32, #tpu.memory_space<vmem>>, vector<8x128xf32>
    tpu.vector_store %arg2[%c0_109, %c0_110], %248 {strides = array<i32>} : memref<8x128xf32, #tpu.memory_space<vmem>>, vector<8x128xf32>,
    return
  }
}

</mosaic_0001>

<bundles_post_ra>
// kernel: hedger_get_pnl.1
= control target key start
LH: loop header
LB: loop body
LE: loop exit
PB: predicated region body
PF: predicated region fallthrough
CT: control target
= control target key end

     0   :  { %7 = vsyncpa [#allocation3], 0  ;;  %s298_s9 = smov [#allocation2]   ;;  %s427_s0 = inlined_call_operand.vmem [shape: f32[8,128], index: 0, kind: input, shape index: {}]   ;;  %s428_s1 = inlined_call_operand.hbm [shape: f32[200,128], index: 1, kind: input, shape index: {}]   ;;  %s429_s2 = inlined_call_operand.vmem [shape: f32[8,128], index: 2, kind: output, shape index: {}]  }
   0x1   :  { %s15_s10 = sshll.u32 %s298_s9, 4  ;;  %s274_s13 = scalar_lea.hbm %s428_s1, 3200  ;;  %s16_s10 = int_to_ptr.vmem [resolvable:$true] %s15_s10 }
   0x2   :  { %p275_p0 = scmp.ne.s32.totalorder %s428_s1, %s274_s13  ;;  %p278_p1 = scmp.lt.u32.totalorder %s274_s13, %s428_s1 }
   0x4   :  { %p280_p2 = pnand %p278_p1, %p275_p0 }
   0x6   :  { %283 = shalt.err (!%p280_p2)
}
   0x7   :  { %s284_s18 = scalar_lea.vmem %s16_s10, 3200  ;;  %p289_p4 = scmp.lt.s32.totalorder %s16_s10, %s16_s10 }
   0x8   :  { %p285_p3 = scmp.ne.s32.totalorder %s16_s10, %s284_s18  ;;  %p290_p5 = scmp.lt.s32.totalorder %s284_s18, %s284_s18 }
   0xa   :  { %p291_p6 = por %p290_p5, %p289_p4 }
   0xc   :  { %p292_p7 = pnand %p291_p6, %p285_p3 }
   0xe   :  { %295 = shalt.err (!%p292_p7)
}
   0xf   :  { %s299_s19 = smov 128   ;;  %s300_s20 = smov 8  }
  0x10   :  { %21 = dma.hbm_to_vmem [thread:$0]  %s428_s1, 3200, %s16_s10, [#allocation3], %s299_s19, %s299_s19, %s300_s20  }
  0x11   :  { %296 = dma.done.wait [#allocation3], 3200  }
  0x12   :  { %297 = vsyncadd [#allocation3], 4294964096  ;;  %v25_v0 = vlaneseq  ;;  %v338_v3 = vld [vmem:[%s427_s0] sm:$0x1]  ;;  %v343_v4 = vld [vmem:[%s427_s0 + $0x2] sm:$0x1] }
  0x13   :  { %v348_v5 = vld [vmem:[%s427_s0 + $0x4] sm:$0x1]  ;;  %v353_v6 = vld [vmem:[%s427_s0 + $0x6] sm:$0x1]  ;;  %v67_v18 = vld [vmem:[#allocation2 + $0x8] sm:$0xff]  ;;  %vm142_vm5 = vcmask 1040384  }
  0x14   :  { %v330_v1 = vshrl.u32 %v25_v0, 7  ;;  %v50_v10 = vld [vmem:[#allocation2] sm:$0xff]  ;;  %v69_v20 = vld [vmem:[#allocation2 + $0x28] sm:$0xff]  ;;  %v84_v27 = vld [vmem:[#allocation2 + $0x10] sm:$0xff] }
  0x15   :  { %v52_v12 = vld [vmem:[#allocation2 + $0x20] sm:$0xff]  ;;  %v72_v21 = vld [vmem:[#allocation2 + $0x48] sm:$0xff]  ;;  %v86_v30 = vld [vmem:[#allocation2 + $0x30] sm:$0xff] }
  0x16   :  { %v333_v2 = vsub.s32 0, %v330_v1  ;;  %v55_v13 = vld [vmem:[#allocation2 + $0x40] sm:$0xff]  ;;  %v75_v22 = vld [vmem:[#allocation2 + $0x68] sm:$0xff]  ;;  %v89_v31 = vld [vmem:[#allocation2 + $0x50] sm:$0xff]  ;;  %vm148_vm8 = vcmp.eq.s32.totalorder %v330_v1, 0  ;;  %vm242_vm9 = vcmp.eq.s32.totalorder %v330_v1, 1 }
  0x17   :  { %v58_v14 = vld [vmem:[#allocation2 + $0x60] sm:$0xff]  ;;  %v92_v32 = vld [vmem:[#allocation2 + $0x70] sm:$0xff]  ;;  %v101_v38 = vld [vmem:[#allocation2 + $0x18] sm:$0xff] }
  0x18   :  { %v36_v7 = vrot.slane %v338_v3, %v333_v2  ;;  %v40_v8 = vrot.slane %v343_v4, %v333_v2  ;;  %v44_v9 = vrot.slane %v348_v5, %v333_v2  ;;  %v48_v11 = vrot.slane %v353_v6, %v333_v2  ;;  %v363_v34 = vld [vmem:[#allocation2 + $0x80] sm:$0xff]  ;;  %v103_v41 = vld [vmem:[#allocation2 + $0x38] sm:$0xff]  ;;  %v78_v46 = vld [vmem:[#allocation2 + $0x88] sm:$0xff] }
  0x19   :  { %v106_v42 = vld [vmem:[#allocation2 + $0x58] sm:$0xff]  ;;  %v368_v49 = vld [vmem:[%s427_s0 + $0x1] sm:$0x1]  ;;  %v373_v52 = vld [vmem:[%s427_s0 + $0x3] sm:$0x1] }
  0x1a   :  { %v51_v15 = vmul.f32 %v50_v10, %v36_v7  ;;  %v53_v16 = vmul.f32 %v52_v12, %v40_v8  ;;  %v56_v17 = vmul.f32 %v55_v13, %v44_v9  ;;  %v68_v19 = vmul.f32 %v67_v18, %v36_v7  ;;  %v109_v43 = vld [vmem:[#allocation2 + $0x78] sm:$0xff]  ;;  %v378_v53 = vld [vmem:[%s427_s0 + $0x5] sm:$0x1]  ;;  %v383_v54 = vld [vmem:[%s427_s0 + $0x7] sm:$0x1]  ;;  %s301_s0 = smov 1  }
  0x1b   :  { %v59_v24 = vmul.f32 %v58_v14, %v48_v11  ;;  %v70_v25 = vmul.f32 %v69_v20, %v40_v8  ;;  %v73_v26 = vmul.f32 %v72_v21, %v44_v9  ;;  %v76_v28 = vmul.f32 %v75_v22, %v48_v11  ;;  %v95_v60 = vld [vmem:[#allocation2 + $0x90] sm:$0xff] }
  0x1c   :  { %v54_v23 = vadd.f32 %v53_v16, %v51_v15  ;;  %v85_v29 = vmul.f32 %v84_v27, %v36_v7  ;;  %v87_v36 = vmul.f32 %v86_v30, %v40_v8  ;;  %v90_v37 = vmul.f32 %v89_v31, %v44_v9  ;;  %v112_v15 = vld [vmem:[#allocation2 + $0x98] sm:$0xff] }
  0x1d   :  { %v71_v35 = vadd.f32 %v70_v25, %v68_v19  ;;  %v93_v39 = vmul.f32 %v92_v32, %v48_v11  ;;  %v102_v40 = vmul.f32 %v101_v38, %v36_v7  ;;  %v104_v48 = vmul.f32 %v103_v41, %v40_v8 }
  0x1e   :  { %v57_v33 = vadd.f32 %v56_v17, %v54_v23  ;;  %v88_v47 = vadd.f32 %v87_v36, %v85_v29  ;;  %v107_v50 = vmul.f32 %v106_v42, %v44_v9  ;;  %v110_v51 = vmul.f32 %v109_v43, %v48_v11 }
  0x1f   :  { %v74_v45 = vadd.f32 %v73_v26, %v71_v35  ;;  %v161_v55 = vrot.slane %v368_v49, %v333_v2  ;;  %v105_v59 = vadd.f32 %v104_v48, %v102_v40  ;;  %v165_v61 = vrot.slane %v373_v52, %v333_v2  ;;  %v64_v48 = vld [vmem:[#allocation2 + $0xa0] sm:$0xff] }
  0x20   :  { %v60_v44 = vadd.f32 %v59_v24, %v57_v33  ;;  %v91_v58 = vadd.f32 %v90_v37, %v88_v47  ;;  %v169_v62 = vrot.slane %v378_v53, %v333_v2  ;;  %v173_v63 = vrot.slane %v383_v54, %v333_v2 }
  0x21   :  { %v77_v57 = vadd.f32 %v76_v28, %v74_v45  ;;  %v174_v7 = vmul.f32 %v161_v55, %v50_v10  ;;  %v108_v11 = vadd.f32 %v107_v50, %v105_v59  ;;  %v175_v16 = vmul.f32 %v165_v61, %v52_v12 }
  0x22   :  { %v62_v56 = vadd.f32 %v363_v34, %v60_v44  ;;  %v94_v9 = vadd.f32 %v93_v39, %v91_v58  ;;  %v177_v17 = vmul.f32 %v169_v62, %v55_v13  ;;  %v179_v19 = vmul.f32 %v173_v63, %v58_v14  ;;  %v98_v58 = vld [vmem:[#allocation2 + $0xb0] sm:$0xff] }
  0x23   :  { %v79_v8 = vadd.f32 %v78_v46, %v77_v57  ;;  %v185_v23 = vmul.f32 %v161_v55, %v67_v18  ;;  %v111_v25 = vadd.f32 %v110_v51, %v108_v11  ;;  %v186_v26 = vmul.f32 %v165_v61, %v69_v20 }
  0x24   :  { %258 = vtanh.f32 %v62_v56  ;;  %v96_v24 = vadd.f32 %v95_v60, %v94_v9  ;;  %v176_v28 = vadd.f32 %v175_v16, %v174_v7  ;;  %v188_v29 = vmul.f32 %v169_v62, %v72_v21  ;;  %v49_v56 = vld [vmem:[#allocation2 + $0xc0] sm:$0xff]  ;;  %v115_v7 = vld [vmem:[#allocation2 + $0xb8] sm:$0xff] }
  0x25   :  { %260 = vtanh.f32 %v79_v8  ;;  %v190_v33 = vmul.f32 %v173_v63, %v75_v22  ;;  %v196_v35 = vmul.f32 %v161_v55, %v84_v27  ;;  %v113_v36 = vadd.f32 %v112_v15, %v111_v25 }
  0x26   :  { %262 = vtanh.f32 %v96_v24  ;;  %v187_v10 = vadd.f32 %v186_v26, %v185_v23  ;;  %v197_v37 = vmul.f32 %v165_v61, %v86_v30  ;;  %v178_v40 = vadd.f32 %v177_v17, %v176_v28  ;;  %v81_v30 = vld [vmem:[#allocation2 + $0xa8] sm:$0xff] }
  0x27   :  { %v199_v39 = vmul.f32 %v169_v62, %v89_v31  ;;  %v201_v44 = vmul.f32 %v173_v63, %v92_v32  ;;  %v207_v45 = vmul.f32 %v161_v55, %v101_v38  ;;  %264 = vtanh.f32 %v113_v36 }
  0x28   :  { %v189_v12 = vadd.f32 %v188_v29, %v187_v10  ;;  %v198_v13 = vadd.f32 %v197_v37, %v196_v35  ;;  %v208_v14 = vmul.f32 %v165_v61, %v103_v41  ;;  %v180_v18 = vadd.f32 %v179_v19, %v178_v40 }
  0x29   :  { %v210_v47 = vmul.f32 %v169_v62, %v106_v42  ;;  %v212_v22 = vmul.f32 %v173_v63, %v109_v43 }
  0x2a   :  { %v191_v20 = vadd.f32 %v190_v33, %v189_v12  ;;  %v200_v50 = vadd.f32 %v199_v39, %v198_v13  ;;  %v209_v21 = vadd.f32 %v208_v14, %v207_v45  ;;  %v181_v27 = vadd.f32 %v180_v18, %v363_v34 }
  0x2b   :  { %v231_v14 = vsub.f32 %v378_v53, %v383_v54 }
  0x2c   :  { %v192_v57 = vadd.f32 %v191_v20, %v78_v46  ;;  %v202_v31 = vadd.f32 %v201_v44, %v200_v50  ;;  %v211_v32 = vadd.f32 %v210_v47, %v209_v21  ;;  %266 = vtanh.f32 %v181_v27 }
  0x2d   :  { %v134_v44 = vsub.f32 %v348_v5, %v353_v6 }
  0x2e   :  { %v259_v51 = vpop.eup %258  ;;  %268 = vtanh.f32 %v192_v57  ;;  %v203_v41 = vadd.f32 %v202_v31, %v95_v60  ;;  %v213_v42 = vadd.f32 %v212_v22, %v211_v32  ;;  %v396_v60 = vand.u32 127, %v25_v0 }
  0x2f   :  { %v65_v38 = vmul.f32 %v259_v51, %v64_v48  ;;  %v261_v55 = vpop.eup %260 }
  0x30   :  { %v82_v61 = vmul.f32 %v261_v55, %v81_v30  ;;  %v263_v62 = vpop.eup %262  ;;  %270 = vtanh.f32 %v203_v41  ;;  %v214_v43 = vadd.f32 %v213_v42, %v112_v15  ;;  %vm124_vm0 = vcmp.ge.s32.totalorder %v396_v60, 1 }
  0x31   :  { %v66_v59 = vadd.f32 %v65_v38, %v49_v56  ;;  %v99_v63 = vmul.f32 %v263_v62, %v98_v58  ;;  %v265_v8 = vpop.eup %264  ;;  %vm125_vm1 = vcmp.le.s32.totalorder %v396_v60, 6  ;;  %vm140_vm4 = vcmp.lt.s32.totalorder %v396_v60, 8 }
  0x32   :  { %272 = vtanh.f32 %v214_v43  ;;  %v116_v9 = vmul.f32 %v265_v8, %v115_v7  ;;  %vm126_vm2 = vmand %vm124_vm0, %vm125_vm1  ;;  %vm146_vm7 = vcmp.eq.s32.totalorder %v396_v60, 127 }
  0x33   :  { %v83_v34 = vadd.f32 %v82_v61, %v66_v59 }
  0x35   :  { %v100_v46 = vadd.f32 %v99_v63, %v83_v34 }
  0x36   :  { %v267_v16 = vpop.eup %266 }
  0x37   :  { %v117_v11 = vadd.f32 %v116_v9, %v100_v46  ;;  %v183_v23 = vmul.f32 %v267_v16, %v64_v48 }
  0x38   :  { %v269_v19 = vpop.eup %268 }
  0x39   :  { %v118_v17 = vrot.slane %v117_v11, 4  ;;  %v194_v25 = vmul.f32 %v269_v19, %v81_v30  ;;  %v184_v28 = vadd.f32 %v183_v23, %v49_v56 }
  0x3a   :  { %v271_v26 = vpop.eup %270 }
  0x3b   :  { %v119_v24 = vadd.f32 %v118_v17, %v117_v11  ;;  %v205_v15 = vmul.f32 %v271_v26, %v98_v58  ;;  %v195_v35 = vadd.f32 %v194_v25, %v184_v28 }
  0x3c   :  { %v273_v33 = vpop.eup %272 }
  0x3d   :  { %v120_v29 = vrot.slane %v119_v24, 2  ;;  %v216_v10 = vmul.f32 %v273_v33, %v115_v7  ;;  %v206_v37 = vadd.f32 %v205_v15, %v195_v35 }
  0x3f   :  { %v121_v36 = vadd.f32 %v120_v29, %v119_v24  ;;  %v217_v0 = vadd.f32 %v216_v10, %v206_v37 }
  0x41   :  { %v122_v40 = vrot.slane %v121_v36, 1  ;;  %v218_v45 = vrot.slane %v217_v0, 4 }
  0x43   :  { %v123_v39 = vadd.f32 %v122_v40, %v121_v36  ;;  %v219_v13 = vadd.f32 %v218_v45, %v217_v0 }
  0x45   :  { %v127_v12 = vsel %vm126_vm2, %v123_v39, 0.0  ;;  %v220_v18 = vrot.slane %v219_v13, 2 }
  0x46   :  { %128 = vrot.lane.b32.xlu0 %v127_v12, %s301_s0  ;;  %v137_v27 = vmul.f32 %v134_v44, %v127_v12 }
  0x47   :  { %v221_v47 = vadd.f32 %v220_v18, %v219_v13 }
  0x48   :  { %v138_v56 = vmul.f32 0.004, %v137_v27 }
  0x49   :  { %v222_v48 = vrot.slane %v221_v47, 1 }
  0x4b   :  { %v223_v20 = vadd.f32 %v222_v48, %v221_v47 }
  0x4d   :  { %v224_v50 = vsel %vm126_vm2, %v223_v20, 0.0 }
  0x4e   :  { %225 = vrot.lane.b32.xlu0 %v224_v50, %s301_s0  ;;  %v234_v38 = vmul.f32 %v231_v14, %v224_v50 }
  0x50   :  { %v235_v58 = vmul.f32 0.004, %v234_v38 }
  0xb8   :  { %v129_v21 = vpop.permute.xlu0 %128 }
  0xb9   :  { %v130_v22 = vsub.f32 %v127_v12, %v129_v21 }
  0xbb   :  { %v131_v5 = vsel %vm124_vm0, %v130_v22, 0.0 }
  0xbc   :  { %vm132_vm3 = vcmp.gt.f32.partialorder %v131_v5, 0.0 }
  0xbd   :  { %v133_v6 = vsel %vm132_vm3, %v343_v4, %v338_v3 }
  0xbe   :  { %v135_v51 = vsub.f32 0.0, %v133_v6 }
  0xc0   :  { %v136_v30 = vmul.f32 %v135_v51, %v131_v5  ;;  %v226_v54 = vpop.permute.xlu0 %225 }
  0xc1   :  { %v227_v57 = vsub.f32 %v224_v50, %v226_v54 }
  0xc2   :  { %v139_v53 = vsub.f32 %v136_v30, %v138_v56 }
  0xc3   :  { %v228_v55 = vsel %vm124_vm0, %v227_v57, 0.0 }
  0xc4   :  { %v141_v31 = vsel %vm140_vm4, %v139_v53, 0.0  ;;  %vm229_vm6 = vcmp.gt.f32.partialorder %v228_v55, 0.0 }
  0xc5   :  { %v143_v32 = vsel %vm142_vm5, %v141_v31, 0.0  ;;  %v230_v3 = vsel %vm229_vm6, %v373_v52, %v368_v49 }
  0xc6   :  { %144 = vadd.xlane.f32.xlu1 %v143_v32  ;;  %v232_v4 = vsub.f32 0.0, %v230_v3 }
  0xc8   :  { %v233_v41 = vmul.f32 %v232_v4, %v228_v55 }
  0xca   :  { %v236_v42 = vsub.f32 %v233_v41, %v235_v58 }
  0xcc   :  { %v237_v59 = vsel %vm140_vm4, %v236_v42, 0.0 }
  0xcd   :  { %v238_v61 = vsel %vm142_vm5, %v237_v59, 0.0 }
  0xce   :  { %239 = vadd.xlane.f32.xlu1 %v238_v61 }
 0x153   :  { %v145_v62 = vpop.xlane.xlu1 %144 }
 0x154   :  { %v147_v7 = vsel %vm146_vm7, %v145_v62, %v127_v12 }
 0x155   :  { %v152_v43 = vrot.slane %v147_v7, %v333_v2 }
 0x157   :  { %v153_v63 = vsel %vm148_vm8, %v152_v43, 0.0 }
 0x15b   :  { %v240_v34 = vpop.xlane.xlu1 %239 }
 0x15c   :  { %v241_v49 = vsel %vm146_vm7, %v240_v34, %v224_v50 }
 0x15d   :  { %v246_v52 = vrot.slane %v241_v49, %v333_v2 }
 0x15f   :  { %v247_v8 = vsel %vm242_vm9, %v246_v52, %v153_v63 }
 0x160   :  { %248 = vst [vmem:[%s429_s2] sm:$0xff] %v247_v8 }
 0x161   :  { %253 = vsyncpa [#allocation3], 1 }

</bundles_post_ra>
